<compile_context>
chip_gen: v5e
topology: v5e:2x2
jax: 0.10.0
libtpu: 0.0.40
codegen_flags: <defaults>
</compile_context>

<pallas_src>
import jax
import jax.numpy as jnp
from jax.experimental import pallas as pl
from jax.experimental.pallas import tpu as pltpu


# ----------------------------- config (QuantizerConfig defaults) -------------
BITS = 8
SIGNED = True          # signedness_to_force=True (symmetric, signed activations)
IS_WEIGHTS = False
PER_CHANNEL = False    # per-tensor -> scale_shape == 1

# set_level_ranges() for symmetric / signed (NNCF):
if SIGNED:
    LEVEL_HIGH = 2 ** (BITS - 1) - 1          # 127
    LEVEL_LOW = -(LEVEL_HIGH + 1)             # -128
    if IS_WEIGHTS:
        LEVEL_LOW += 1
else:
    LEVEL_HIGH = 2 ** BITS - 1
    LEVEL_LOW = 0
LEVELS = 2 ** BITS - (1 if IS_WEIGHTS else 0)  # 256

SCALE_EPS = 1e-16      # guard: scale <= 0 would make the range degenerate

_LANES = 128
_MAX_TILE_BYTES = 2 * 1024 * 1024     # per-block budget; x4 (double-buffered in+out) = 8 MiB VMEM
_MIN_SPLIT_ROWS = 256                 # once a lone tile reaches 256 rows, split into >=2 grid
                                      # steps so v7x's two TensorCores both get work
_VMEM_LIMIT_BYTES = 32 * 1024 * 1024  # explicit scoped-VMEM limit (safe on v5e/v6e/v7x)
_MIN_PALLAS_BYTES_DEFAULT = 1 << 20   # below ~1 MiB the fused XLA path beats pallas_call launch


def _sublanes(dtype) -> int:
    """Minimum second-minor alignment for a lane-dense (rows, 128) slab."""
    itemsize = jnp.dtype(dtype).itemsize
    return max(8, 32 // itemsize)      # f32 -> 8, bf16/f16 -> 16, int8/fp8 -> 32


# ----------------------------- Pallas kernel ---------------------------------
def _fake_quant_kernel(params_ref, x_ref, o_ref):
    """Symmetric fake-quantize one (tile_rows, 128) tile of x.

    params_ref (SMEM, f32[2]) = [s, inv_s] with s = LEVEL_HIGH / scale and
    inv_s = scale / LEVEL_HIGH, precomputed in the wrapper.  Integer-domain
    form:  q = clip(round(x * s), LEVEL_LOW, LEVEL_HIGH);  out = q * inv_s.
    Input is upcast to f32 in-register; output is stored in o_ref.dtype.
    """
    s = params_ref[0]
    inv_s = params_ref[1]
    x = x_ref[...].astype(jnp.float32)
    q = jnp.clip(jnp.round(x * s), float(LEVEL_LOW), float(LEVEL_HIGH))
    o_ref[...] = (q * inv_s).astype(o_ref.dtype)


# ----------------------------- scalar prologue --------------------------------
def _level_range_params(scale):
    """set_level_ranges() + scalar prologue: derive [s, inv_s] from the scale."""
    scale0 = jnp.maximum(jnp.asarray(scale, jnp.float32).reshape(()), SCALE_EPS)
    s = jnp.float32(LEVEL_HIGH) / scale0
    inv_s = scale0 / jnp.float32(LEVEL_HIGH)
    return s, inv_s


def _fused_fake_quant(x, s, inv_s):
    """Plain-jnp path (same math as the kernel).  XLA fuses this into a single
    1-read/1-write elementwise pass — optimal for tiny or lane-unaligned inputs."""
    q = jnp.clip(jnp.round(x.astype(jnp.float32) * s),
                 float(LEVEL_LOW), float(LEVEL_HIGH))
    return (q * inv_s).astype(x.dtype)


# ----------------------------- Pallas path ------------------------------------
def _pallas_fake_quant(x, s, inv_s):
    dtype = x.dtype
    sub = _sublanes(dtype)
    itemsize = jnp.dtype(dtype).itemsize
    rows = x.size // _LANES            # caller guarantees x.size % (sub * 128) == 0
    x2d = x.reshape(rows, _LANES)      # contiguous row-major reshape: zero-copy

    # Balanced, lane-dense tiles: biggest block under ~2 MiB; force an even
    # number of >=2 grid steps once a single tile is big enough that sharding
    # across v7x's two TensorCores pays for the extra ~0.35 us per grid step.
    max_tile_rows = max(sub, (_MAX_TILE_BYTES // (_LANES * itemsize)) // sub * sub)
    num_tiles = -(-rows // max_tile_rows)
    if num_tiles == 1 and rows >= 2 * _MIN_SPLIT_ROWS:
        num_tiles = 2
    if num_tiles > 1 and num_tiles % 2:
        num_tiles += 1
    tile_rows = -(-rows // num_tiles)              # ceil
    tile_rows = -(-tile_rows // sub) * sub         # round up to sublane multiple
    tile_rows = min(tile_rows, rows)
    grid = (-(-rows // tile_rows),)                # last block may be partial (masked)

    params = jnp.stack([s, inv_s])                 # f32[2] -> SMEM

    out2d = pl.pallas_call(
        _fake_quant_kernel,
        out_shape=jax.ShapeDtypeStruct((rows, _LANES), dtype),
        grid_spec=pltpu.PrefetchScalarGridSpec(
            num_scalar_prefetch=0,
            grid=grid,
            in_specs=[
                pl.BlockSpec(memory_space=pltpu.MemorySpace.SMEM),      # params
                pl.BlockSpec((tile_rows, _LANES), lambda i: (i, 0)),    # x tile
            ],
            out_specs=pl.BlockSpec((tile_rows, _LANES), lambda i: (i, 0)),
        ),
        compiler_params=pltpu.CompilerParams(
            # "parallel" only pays on v7x (2 TCs); measured-neutral on v5e/v6e.
            dimension_semantics=("parallel",),
            vmem_limit_bytes=_VMEM_LIMIT_BYTES,
        ),
    )(params, x2d)

    return out2d.reshape(x.shape)                  # zero-copy reshape back


# ----------------------------- forward ----------------------------------------
def base_quantizer_forward(x, scale, *, init_stage=False,
                           min_pallas_bytes=_MIN_PALLAS_BYTES_DEFAULT):
    """Forward of BaseQuantizer (NNCF symmetric fake quant, per-tensor scale).

    x:     float array (any shape; NCHW in the demo), kept in its native dtype.
    scale: float32 array of shape (1,) (scale_shape == 1).
    min_pallas_bytes: inputs smaller than this, or whose element count is not a
        multiple of one lane-dense (sublane, 128) block, take the fused jnp
        path (already 1-read/1-write optimal, no pallas_call launch cost).
    """
    if init_stage:
        # BaseQuantizer.forward short-circuits during the initialization stage.
        return x

    s, inv_s = _level_range_params(scale)

    sub = _sublanes(x.dtype)
    aligned = x.size > 0 and x.size % (sub * _LANES) == 0
    if (not aligned) or (x.size * jnp.dtype(x.dtype).itemsize < min_pallas_bytes):
        return _fused_fake_quant(x, s, inv_s)
    return _pallas_fake_quant(x, s, inv_s)


# ----------------------------- references (plain JAX) -------------------------
def _jnp_forward(x, scale):
    """Same math as the kernel, in plain jnp (bit-level comparison target)."""
    s, inv_s = _level_range_params(scale)
    return _fused_fake_quant(x, s, inv_s)


def _canonical_reference(x, scale):
    """Canonical NNCF symmetric fake-quant formula (clip -> shift -> scale ->
    round -> unscale -> unshift), in f32.  Algebraically equal to the kernel's
    integer-domain form; float rounding can land on the other side of a
    round-half boundary, i.e. differ by exactly one quant step on rare inputs."""
    s0 = jnp.maximum(jnp.asarray(scale, jnp.float32).reshape(()), SCALE_EPS)
    input_high = s0
    input_low = s0 * (LEVEL_LOW / LEVEL_HIGH)
    srange = (LEVELS - 1) / (input_high - input_low)
    xf = x.astype(jnp.float32)
    xc = jnp.clip(xf, input_low, input_high)
    return jnp.round((xc - input_low) * srange) / srange + input_low


if __name__ == "__main__":
    key = jax.random.PRNGKey(0)
    k0, k1, k2, k3 = jax.random.split(key, 4)

    scale = jnp.ones((1,), dtype=jnp.float32)   # per-tensor scale (scale_shape == 1)
    quant_step = 1.0 / LEVEL_HIGH               # one quantization step at scale == 1

    def check_canonical(out, x):
        # Kernel math is algebraically identical to the canonical NNCF formula;
        # fp error may flip a round-half boundary on a tiny fraction of elements
        # (difference of exactly one quant step).
        diff = jnp.abs(out.astype(jnp.float32) - _canonical_reference(x, scale))
        assert float(jnp.max(diff)) <= quant_step + 1e-4
        assert float(jnp.mean((diff > 1e-3).astype(jnp.float32))) < 5e-3

    # 1) demo input (NCHW, 2*4*16*16 = 2048 elems) through the Pallas path.
    x = jax.random.normal(k0, (2, 4, 16, 16), dtype=jnp.float32)
    out = jax.block_until_ready(base_quantizer_forward(x, scale, min_pallas_bytes=0))
    assert out.shape == x.shape and out.dtype == x.dtype
    assert jnp.allclose(out, _jnp_forward(x, scale), atol=1e-5, rtol=0)
    check_canonical(out, x)

    # 2) init_stage path: identity.
    out_id = jax.block_until_ready(base_quantizer_forward(x, scale, init_stage=True))
    assert jnp.array_equal(out_id, x)

    # 3) default small-input fast path (fused jnp) matches the Pallas result.
    out_fast = jax.block_until_ready(base_quantizer_forward(x, scale))
    assert jnp.allclose(out_fast, out, atol=1e-5, rtol=0)

    # 4) larger aligned f32 input: exercises multi-step grid / balanced tiles.
    x_big = jax.random.normal(k1, (8, 16, 32, 32), dtype=jnp.float32) * 0.5
    out_big = jax.block_until_ready(
        base_quantizer_forward(x_big, scale, min_pallas_bytes=0))
    assert jnp.allclose(out_big, _jnp_forward(x_big, scale), atol=1e-5, rtol=0)
    check_canonical(out_big, x_big)

    # 5) native bf16 path (no f32 round-trip through HBM).
    x_bf = jax.random.normal(k2, (2, 4, 16, 16), dtype=jnp.float32).astype(jnp.bfloat16)
    out_bf = jax.block_until_ready(
        base_quantizer_forward(x_bf, scale, min_pallas_bytes=0))
    assert out_bf.dtype == jnp.bfloat16 and out_bf.shape == x_bf.shape
    assert jnp.allclose(out_bf.astype(jnp.float32),
                        _jnp_forward(x_bf, scale).astype(jnp.float32),
                        atol=1e-2, rtol=0)

    # 6) ragged element count -> fused fallback (no pad / slice-back ever).
    x_odd = jax.random.normal(k3, (3, 5, 7, 11), dtype=jnp.float32)
    out_odd = jax.block_until_ready(
        base_quantizer_forward(x_odd, scale, min_pallas_bytes=0))
    assert out_odd.shape == x_odd.shape and out_odd.dtype == x_odd.dtype
    check_canonical(out_odd, x_odd)

    print("KERNEL_OK")
</pallas_src>

<mosaic_0001>
module attributes {stable_mosaic.version = 11 : i64} {
  func.func @_fake_quant_kernel(%arg0: i32, %arg1: memref<2xf32, #tpu.memory_space<smem>>, %arg2: memref<16x128xf32, #tpu.memory_space<vmem>>, %arg3: memref<16x128xf32, #tpu.memory_space<vmem>>) attributes {dimension_semantics = [#tpu.dimension_semantics<parallel>], iteration_bounds = array<i64: 1>, scalar_prefetch = 0 : i64, scratch_operands = 0 : i64, tpu.core_type = #tpu.core_type<tc>, window_params = [{transform_indices = @transform_0, window_bounds = array<i64: 2>}, {transform_indices = @transform_1, window_bounds = array<i64: 16, 128>}, {transform_indices = @transform_2, window_bounds = array<i64: 16, 128>}]} {
    %c0 = arith.constant 0 : index
    %0 = memref.load %arg1[%c0] : memref<2xf32, #tpu.memory_space<smem>>
    %c1 = arith.constant 1 : index
    %1 = memref.load %arg1[%c1] : memref<2xf32, #tpu.memory_space<smem>>
    %c0_0 = arith.constant 0 : index
    %c0_1 = arith.constant 0 : index
    %2 = vector.load %arg2[%c0_0, %c0_1] : memref<16x128xf32, #tpu.memory_space<vmem>>, vector<16x128xf32>
    %3 = vector.broadcast %0 : f32 to vector<16x128xf32>
    %4 = arith.mulf %2, %3 : vector<16x128xf32>
    %5 = math.roundeven %4 : vector<16x128xf32>
    %cst = arith.constant -1.280000e+02 : f32
    %cst_2 = arith.constant 1.270000e+02 : f32
    %6 = vector.broadcast %cst : f32 to vector<16x128xf32>
    %7 = arith.maximumf %6, %5 : vector<16x128xf32>
    %8 = vector.broadcast %cst_2 : f32 to vector<16x128xf32>
    %9 = arith.minimumf %8, %7 : vector<16x128xf32>
    %10 = vector.broadcast %1 : f32 to vector<16x128xf32>
    %11 = arith.mulf %9, %10 : vector<16x128xf32>
    %c0_3 = arith.constant 0 : index
    %c0_4 = arith.constant 0 : index
    %12 = vector.load %arg3[%c0_3, %c0_4] : memref<16x128xf32, #tpu.memory_space<vmem>>, vector<16x128xf32>
    tpu.vector_store %arg3[%c0_3, %c0_4], %11 {strides = array<i32>} : memref<16x128xf32, #tpu.memory_space<vmem>>, vector<16x128xf32>,
    return
  }
  func.func @transform_0(%arg0: i32) -> i32 {
    %c0_i32 = arith.constant 0 : i32
    %c0_i32_0 = arith.constant 0 : i32
    return %c0_i32 : i32
  }
  func.func @transform_1(%arg0: i32) -> (i32, i32) {
    %c0_i32 = arith.constant 0 : i32
    %c0_i32_0 = arith.constant 0 : i32
    return %arg0, %c0_i32 : i32, i32
  }
  func.func @transform_2(%arg0: i32) -> (i32, i32) {
    %c0_i32 = arith.constant 0 : i32
    %c0_i32_0 = arith.constant 0 : i32
    return %arg0, %c0_i32 : i32, i32
  }
}

</mosaic_0001>

<bundles_post_ra>
// kernel: tpu_custom_call.1
= control target key start
LH: loop header
LB: loop body
LE: loop exit
PB: predicated region body
PF: predicated region fallthrough
CT: control target
= control target key end

     0   :  { %7 = vsyncpa [#allocation5], 0  ;;  %s202_s0 = inlined_call_operand.hbm [shape: f32[2], index: 0, kind: input, shape index: {}]   ;;  %s203_s1 = inlined_call_operand.hbm [shape: f32[16,128], index: 1, kind: input, shape index: {}]   ;;  %s204_s2 = inlined_call_operand.hbm [shape: f32[16,128], index: 2, kind: output, shape index: {}]  }
   0x1   :  { %8 = vsyncpa [#allocation3], 0 }
   0x2   :  { %9 = vsyncpa [#allocation4], 0  ;;  %s15_s11 = sshll.u32 %s202_s0, 4  ;;  %s23_s14 = sshll.u32 %s203_s1, 4  ;;  %s16_s11 = int_to_ptr.hbm [resolvable:$true] %s15_s11  ;;  %s24_s14 = int_to_ptr.hbm [resolvable:$true] %s23_s14 }
   0x3   :  { %s167_s15 = smov [#allocation2]   ;;  %s168_s16 = smov [#allocation6]  }
   0x4   :  { %18 = dma.hbm_to_smem %s16_s11, 16, %s167_s15, [#allocation5]  }
   0x5   :  { %s25_s17 = sshll.u32 %s168_s16, 4  ;;  %s169_s18 = smov 128   ;;  %s26_s17 = int_to_ptr.vmem [resolvable:$true] %s25_s17 }
   0x6   :  { %s170_s19 = smov 8  }
   0x7   :  { %31 = dma.hbm_to_vmem [thread:$0]  %s24_s14, 256, %s26_s17, [#allocation3], %s169_s18, %s169_s18, %s170_s19  }
   0x8   :  { %161 = dma.done.wait [#allocation5], 16  }
   0x9   :  { %162 = vsyncadd [#allocation5], 4294967280 }
   0xa   :  { %163 = dma.done.wait [#allocation3], 256  }
   0xb   :  { %164 = vsyncadd [#allocation3], 4294967040 }
   0xc   :  { %40 = sfence }
   0xd   :  { %s41_s0 = sld [smem:[#allocation2]]  ;;  %v43_v0 = vld [vmem:[#allocation6] sm:$0xff]  ;;  %v44_v1 = vld [vmem:[#allocation6 + $0x8] sm:$0xff]  ;;  %s171_s20 = smov [#allocation7]  }
   0xe   :  { %s79_s1 = sld [smem:[#allocation2 + $0x1]]  ;;  %s63_s21 = sshll.u32 %s171_s20, 4  ;;  %s64_s21 = int_to_ptr.vmem [resolvable:$true] %s63_s21 }
   0xf   :  { %s65_s24 = sshll.u32 %s204_s2, 4  ;;  %s66_s24 = int_to_ptr.hbm [resolvable:$true] %s65_s24 }
  0x13   :  { %v45_v2 = vstv %s41_s0 }
  0x14   :  { %v46_v3 = vmul.f32 %v45_v2, %v43_v0  ;;  %v47_v4 = vmul.f32 %v45_v2, %v44_v1  ;;  %v54_v20 = vstv %s79_s1 }
  0x16   :  { %v82_v5 = vcvt.f32.s32 %v46_v3  ;;  %v80_v6 = vand.u32 2147483647, %v46_v3  ;;  %v90_v7 = vcvt.f32.s32 %v47_v4  ;;  %v85_v9 = vand.u32 2147483648, %v46_v3 }
  0x17   :  { %v88_v10 = vand.u32 2147483647, %v47_v4  ;;  %v93_v12 = vand.u32 2147483648, %v47_v4 }
  0x18   :  { %v83_v8 = vcvt.s32.f32 %v82_v5  ;;  %v91_v11 = vcvt.s32.f32 %v90_v7  ;;  %vm81_vm0 = vcmp.lt.f32.partialorder %v80_v6, 8388608.0 }
  0x19   :  { %vm89_vm1 = vcmp.lt.f32.partialorder %v88_v10, 8388608.0 }
  0x1a   :  { %v84_v13 = vand.u32 2147483647, %v83_v8  ;;  %v92_v14 = vand.u32 2147483647, %v91_v11 }
  0x1c   :  { %v86_v15 = vor.u32 %v85_v9, %v84_v13  ;;  %v94_v16 = vor.u32 %v93_v12, %v92_v14 }
  0x1e   :  { %v87_v17 = vsel %vm81_vm0, %v86_v15, %v46_v3  ;;  %v95_v19 = vsel %vm89_vm1, %v94_v16, %v47_v4 }
  0x1f   :  { %v50_v18 = vmax.f32 %v87_v17, -128.0  ;;  %v51_v21 = vmax.f32 %v95_v19, -128.0 }
  0x21   :  { %v52_v22 = vmin.f32 %v50_v18, 127.0  ;;  %v53_v23 = vmin.f32 %v51_v21, 127.0 }
  0x23   :  { %v55_v24 = vmul.f32 %v54_v20, %v52_v22  ;;  %v56_v25 = vmul.f32 %v54_v20, %v53_v23 }
  0x25   :  { %57 = vst [vmem:[#allocation7] sm:$0xff] %v55_v24 }
  0x26   :  { %58 = vst [vmem:[#allocation7 + $0x8] sm:$0xff] %v56_v25 }
  0x27   :  { %71 = dma.vmem_to_hbm [thread:$0]  %s64_s21, 256, %s66_s24, [#allocation4], %s169_s18, %s169_s18, %s170_s19  }
  0x28   :  { %165 = dma.done.wait [#allocation4], 256  }
  0x29   :  { %166 = vsyncadd [#allocation4], 4294967040 }
  0x2a   :  { %76 = vsyncpa [#allocation3], 1 }
  0x2b   :  { %77 = vsyncpa [#allocation4], 1 }
  0x2c   :  { %78 = vsyncpa [#allocation5], 1 }

</bundles_post_ra>
